<compile_context>
chip_gen: v7x
topology: tpu7x:2x2x1
jax: 0.10.0
libtpu: 0.0.40
codegen_flags: <defaults>
</compile_context>

<pallas_src>
import jax
import jax.numpy as jnp
from jax.experimental import pallas as pl
from jax.experimental.pallas import tpu as pltpu

IMG = 28 * 28          # 784


def _autoencoder_kernel(
    x_ref,                                   # (TB, 784) f32
    w1, b1, w2, b2, w3, b3, w4, b4,          # fused (block-diag) encoder
    dw1, db1, dw2, db2, dw3, db3, dw4, db4,  # decoder
    o_ref,                                   # (TB, 784) f32
):
    def lin(h, w_ref, b_ref, relu=True):
        # cast activation to the weight dtype (bf16 for the big layers, f32 for
        # the tiny latent layers); always accumulate in f32 on the MXU.
        y = jnp.dot(h.astype(w_ref.dtype), w_ref[...],
                    preferred_element_type=jnp.float32) + b_ref[...]
        return jnp.maximum(y, 0.0) if relu else y

    # fused encoder: upper branch lives in the left block-columns, lower in the
    # right, so one matmul chain computes both; latent z = [c | f]  (TB, 6)
    h = lin(x_ref[...], w1, b1)              # (TB, 256)  bf16 MXU
    h = lin(h, w2, b2)                       # (TB, 128)  bf16 MXU
    h = lin(h, w3, b3)                       # (TB, 24)   f32 (tiny, free)
    z = lin(h, w4, b4, relu=False)           # (TB, 6)    latent [c | f]

    # decoder (concat is already materialized as z's column order)
    h = lin(z, dw1, db1)                     # (TB, 12)   f32
    h = lin(h, dw2, db2)                     # (TB, 64)   f32
    h = lin(h, dw3, db3)                     # (TB, 128)  bf16 MXU
    y = jnp.dot(h.astype(dw4.dtype), dw4[...],
                preferred_element_type=jnp.float32) + db4[...]
    o_ref[...] = jnp.tanh(y)                 # (TB, 784) f32 store


def _const_spec(shape):
    nd = len(shape)
    return pl.BlockSpec(shape, lambda i, _nd=nd: (0,) * _nd)


def new_autoencoder_forward(x, fused_params, *, tile_b=512):
    """x: (B, 784) float32; fused_params: output of prepare_params()."""
    B = x.shape[0]
    if B <= tile_b:
        # single block covering the whole batch: block dims == array dims, so
        # no alignment constraint and zero padding / slicing anywhere.
        TB = B
    else:
        TB = tile_b          # multiple of 8; Pallas masks the partial tail tile
    grid = (pl.cdiv(B, TB),)

    inputs = [x] + list(fused_params)
    in_specs = [pl.BlockSpec((TB, IMG), lambda i: (i, 0))]
    in_specs += [_const_spec(p.shape) for p in fused_params]
    out_spec = pl.BlockSpec((TB, IMG), lambda i: (i, 0))

    param_bytes = sum(int(p.size) * p.dtype.itemsize for p in fused_params)
    flops = 2 * B * (IMG * 256 + 256 * 128 + 128 * 24 + 24 * 6
                     + 6 * 12 + 12 * 64 + 64 * 128 + 128 * IMG)
    cost = pl.CostEstimate(
        flops=flops,
        transcendentals=B * IMG,                        # tanh
        bytes_accessed=B * IMG * (4 + 4) + param_bytes,
    )

    fn = pl.pallas_call(
        _autoencoder_kernel,
        out_shape=jax.ShapeDtypeStruct((B, IMG), jnp.float32),
        grid_spec=pltpu.PrefetchScalarGridSpec(
            num_scalar_prefetch=0,
            grid=grid,
            in_specs=in_specs,
            out_specs=out_spec,
        ),
        compiler_params=pltpu.CompilerParams(
            dimension_semantics=("parallel",),     # megacore split on v7x
            vmem_limit_bytes=48 * 1024 * 1024,     # safe on 64 MiB v7x VMEM
        ),
        cost_estimate=cost,
    )
    return fn(*inputs)


def init_params(key):
    """Deterministic synthetic parameters matching the PyTorch module shapes.

    Weights stored as (in_features, out_features); biases as (1, out_features).
    Returns the 24 raw (unfused, f32) arrays: 4 upper-encoder, 4 lower-encoder,
    4 decoder layers (w, b each).
    """
    enc_dims = [(IMG, 128), (128, 64), (64, 12), (12, 3)]
    dec_dims = [(6, 12), (12, 64), (64, 128), (128, IMG)]

    def linear(k, din, dout):
        kw, kb = jax.random.split(k)
        s = 1.0 / jnp.sqrt(jnp.float32(din))
        w = jax.random.uniform(kw, (din, dout), jnp.float32, -s, s)
        b = jax.random.uniform(kb, (1, dout), jnp.float32, -s, s)
        return w, b

    keys = jax.random.split(key, 12)
    layers = ([linear(keys[i], *enc_dims[i]) for i in range(4)] +
              [linear(keys[4 + i], *enc_dims[i]) for i in range(4)] +
              [linear(keys[8 + i], *dec_dims[i]) for i in range(4)])
    params = []
    for w, b in layers:
        params += [w, b]
    return params


def prepare_params(params):
    """Fuse upper/lower encoders block-diagonally and cast the big matmul
    weights to bf16. One-time preprocessing outside the kernel."""
    (uw1, ub1, uw2, ub2, uw3, ub3, uw4, ub4,
     lw1, lb1, lw2, lb2, lw3, lb3, lw4, lb4,
     dw1, db1, dw2, db2, dw3, db3, dw4, db4) = params

    def block_diag(a, b):
        m, n = a.shape
        p, q = b.shape
        out = jnp.zeros((m + p, n + q), jnp.float32)
        return out.at[:m, :n].set(a).at[m:, n:].set(b)

    w1f = jnp.concatenate([uw1, lw1], axis=1)          # (784, 256)
    b1f = jnp.concatenate([ub1, lb1], axis=1)          # (1, 256)
    w2f = block_diag(uw2, lw2)                         # (256, 128)
    b2f = jnp.concatenate([ub2, lb2], axis=1)          # (1, 128)
    w3f = block_diag(uw3, lw3)                         # (128, 24)
    b3f = jnp.concatenate([ub3, lb3], axis=1)          # (1, 24)
    w4f = block_diag(uw4, lw4)                         # (24, 6) -> latent [c|f]
    b4f = jnp.concatenate([ub4, lb4], axis=1)          # (1, 6)

    bf16 = lambda w: w.astype(jnp.bfloat16)
    return [
        bf16(w1f), b1f, bf16(w2f), b2f, w3f, b3f, w4f, b4f,   # fused encoder
        dw1, db1, dw2, db2, bf16(dw3), db3, bf16(dw4), db4,   # decoder
    ]


def reference_forward(x, params):
    """Pure-JAX f32 reference replicating the PyTorch forward exactly."""
    (uw1, ub1, uw2, ub2, uw3, ub3, uw4, ub4,
     lw1, lb1, lw2, lb2, lw3, lb3, lw4, lb4,
     dw1, db1, dw2, db2, dw3, db3, dw4, db4) = params

    def lin(h, w, b, relu=True):
        y = h @ w + b
        return jnp.maximum(y, 0.0) if relu else y

    c = lin(lin(lin(lin(x, uw1, ub1), uw2, ub2), uw3, ub3), uw4, ub4, relu=False)
    f = lin(lin(lin(lin(x, lw1, lb1), lw2, lb2), lw3, lb3), lw4, lb4, relu=False)
    z = jnp.concatenate([c, f], axis=1)
    h = lin(lin(lin(z, dw1, db1), dw2, db2), dw3, db3)
    return jnp.tanh(h @ dw4 + db4)


if __name__ == "__main__":
    key = jax.random.PRNGKey(0)
    kx, kp = jax.random.split(key)
    B = 2
    x = jax.random.normal(kx, (B, IMG), jnp.float32)
    params = init_params(kp)
    fused = prepare_params(params)

    out = new_autoencoder_forward(x, fused)
    out = jax.block_until_ready(out)

    ref = reference_forward(x, params)
    assert out.shape == (B, IMG)
    # bf16 operands in the dominant matmuls (f32 accumulation) -> relaxed
    # absolute tolerance on the tanh-bounded output vs the f32 reference.
    max_err = float(jnp.max(jnp.abs(out - ref)))
    assert max_err < 5e-2, f"mismatch vs reference: max abs err {max_err}"
    print("KERNEL_OK")
</pallas_src>

<mosaic_0001>
module attributes {stable_mosaic.version = 11 : i64} {
  func.func @_autoencoder_kernel(%arg0: i32, %arg1: memref<2x784xf32, #tpu.memory_space<vmem>>, %arg2: memref<784x256xbf16, #tpu.memory_space<vmem>>, %arg3: memref<1x256xf32, #tpu.memory_space<vmem>>, %arg4: memref<256x128xbf16, #tpu.memory_space<vmem>>, %arg5: memref<1x128xf32, #tpu.memory_space<vmem>>, %arg6: memref<128x24xf32, #tpu.memory_space<vmem>>, %arg7: memref<1x24xf32, #tpu.memory_space<vmem>>, %arg8: memref<24x6xf32, #tpu.memory_space<vmem>>, %arg9: memref<1x6xf32, #tpu.memory_space<vmem>>, %arg10: memref<6x12xf32, #tpu.memory_space<vmem>>, %arg11: memref<1x12xf32, #tpu.memory_space<vmem>>, %arg12: memref<12x64xf32, #tpu.memory_space<vmem>>, %arg13: memref<1x64xf32, #tpu.memory_space<vmem>>, %arg14: memref<64x128xbf16, #tpu.memory_space<vmem>>, %arg15: memref<1x128xf32, #tpu.memory_space<vmem>>, %arg16: memref<128x784xbf16, #tpu.memory_space<vmem>>, %arg17: memref<1x784xf32, #tpu.memory_space<vmem>>, %arg18: memref<2x784xf32, #tpu.memory_space<vmem>>) attributes {dimension_semantics = [#tpu.dimension_semantics<parallel>], iteration_bounds = array<i64: 1>, scalar_prefetch = 0 : i64, scratch_operands = 0 : i64, tpu.core_type = #tpu.core_type<tc>, window_params = [{transform_indices = @transform_0, window_bounds = array<i64: 2, 784>}, {pipeline_mode = #tpu.pipeline_mode<synchronous>, transform_indices = @transform_1, window_bounds = array<i64: 784, 256>}, {pipeline_mode = #tpu.pipeline_mode<synchronous>, transform_indices = @transform_2, window_bounds = array<i64: 1, 256>}, {pipeline_mode = #tpu.pipeline_mode<synchronous>, transform_indices = @transform_3, window_bounds = array<i64: 256, 128>}, {pipeline_mode = #tpu.pipeline_mode<synchronous>, transform_indices = @transform_4, window_bounds = array<i64: 1, 128>}, {pipeline_mode = #tpu.pipeline_mode<synchronous>, transform_indices = @transform_5, window_bounds = array<i64: 128, 24>}, {pipeline_mode = #tpu.pipeline_mode<synchronous>, transform_indices = @transform_6, window_bounds = array<i64: 1, 24>}, {pipeline_mode = #tpu.pipeline_mode<synchronous>, transform_indices = @transform_7, window_bounds = array<i64: 24, 6>}, {pipeline_mode = #tpu.pipeline_mode<synchronous>, transform_indices = @transform_8, window_bounds = array<i64: 1, 6>}, {pipeline_mode = #tpu.pipeline_mode<synchronous>, transform_indices = @transform_9, window_bounds = array<i64: 6, 12>}, {pipeline_mode = #tpu.pipeline_mode<synchronous>, transform_indices = @transform_10, window_bounds = array<i64: 1, 12>}, {pipeline_mode = #tpu.pipeline_mode<synchronous>, transform_indices = @transform_11, window_bounds = array<i64: 12, 64>}, {pipeline_mode = #tpu.pipeline_mode<synchronous>, transform_indices = @transform_12, window_bounds = array<i64: 1, 64>}, {pipeline_mode = #tpu.pipeline_mode<synchronous>, transform_indices = @transform_13, window_bounds = array<i64: 64, 128>}, {pipeline_mode = #tpu.pipeline_mode<synchronous>, transform_indices = @transform_14, window_bounds = array<i64: 1, 128>}, {pipeline_mode = #tpu.pipeline_mode<synchronous>, transform_indices = @transform_15, window_bounds = array<i64: 128, 784>}, {pipeline_mode = #tpu.pipeline_mode<synchronous>, transform_indices = @transform_16, window_bounds = array<i64: 1, 784>}, {transform_indices = @transform_17, window_bounds = array<i64: 2, 784>}]} {
    %c0 = arith.constant 0 : index
    %c0_0 = arith.constant 0 : index
    %0 = vector.load %arg1[%c0, %c0_0] : memref<2x784xf32, #tpu.memory_space<vmem>>, vector<2x784xf32>
    %1 = arith.truncf %0 : vector<2x784xf32> to vector<2x784xbf16>
    %c0_1 = arith.constant 0 : index
    %c0_2 = arith.constant 0 : index
    %2 = vector.load %arg2[%c0_1, %c0_2] : memref<784x256xbf16, #tpu.memory_space<vmem>>, vector<784x256xbf16>
    %cst = arith.constant dense<0.000000e+00> : vector<2x256xf32>
    %3 = tpu.matmul %1, %2, %cst {dimension_numbers = #tpu.dot_dimension_numbers<[1], [0], [0], [1], [0, 0, 1, 1], [], []>} : vector<2x784xbf16>, vector<784x256xbf16>, vector<2x256xf32> -> vector<2x256xf32>
    %c0_3 = arith.constant 0 : index
    %c0_4 = arith.constant 0 : index
    %4 = vector.load %arg3[%c0_3, %c0_4] : memref<1x256xf32, #tpu.memory_space<vmem>>, vector<1x256xf32>
    %5 = vector.broadcast %4 : vector<1x256xf32> to vector<2x256xf32>
    %6 = arith.addf %3, %5 : vector<2x256xf32>
    %cst_5 = arith.constant 0.000000e+00 : f32
    %7 = vector.broadcast %cst_5 : f32 to vector<2x256xf32>
    %8 = arith.maximumf %6, %7 : vector<2x256xf32>
    %9 = arith.truncf %8 : vector<2x256xf32> to vector<2x256xbf16>
    %c0_6 = arith.constant 0 : index
    %c0_7 = arith.constant 0 : index
    %10 = vector.load %arg4[%c0_6, %c0_7] : memref<256x128xbf16, #tpu.memory_space<vmem>>, vector<256x128xbf16>
    %cst_8 = arith.constant dense<0.000000e+00> : vector<2x128xf32>
    %11 = tpu.matmul %9, %10, %cst_8 {dimension_numbers = #tpu.dot_dimension_numbers<[1], [0], [0], [1], [0, 0, 1, 1], [], []>} : vector<2x256xbf16>, vector<256x128xbf16>, vector<2x128xf32> -> vector<2x128xf32>
    %c0_9 = arith.constant 0 : index
    %c0_10 = arith.constant 0 : index
    %12 = vector.load %arg5[%c0_9, %c0_10] : memref<1x128xf32, #tpu.memory_space<vmem>>, vector<1x128xf32>
    %13 = vector.broadcast %12 : vector<1x128xf32> to vector<2x128xf32>
    %14 = arith.addf %11, %13 : vector<2x128xf32>
    %cst_11 = arith.constant 0.000000e+00 : f32
    %15 = vector.broadcast %cst_11 : f32 to vector<2x128xf32>
    %16 = arith.maximumf %14, %15 : vector<2x128xf32>
    %c0_12 = arith.constant 0 : index
    %c0_13 = arith.constant 0 : index
    %17 = vector.load %arg6[%c0_12, %c0_13] : memref<128x24xf32, #tpu.memory_space<vmem>>, vector<128x24xf32>
    %cst_14 = arith.constant dense<0.000000e+00> : vector<2x24xf32>
    %18 = tpu.matmul %16, %17, %cst_14 {dimension_numbers = #tpu.dot_dimension_numbers<[1], [0], [0], [1], [0, 0, 1, 1], [], []>} : vector<2x128xf32>, vector<128x24xf32>, vector<2x24xf32> -> vector<2x24xf32>
    %c0_15 = arith.constant 0 : index
    %c0_16 = arith.constant 0 : index
    %19 = vector.load %arg7[%c0_15, %c0_16] : memref<1x24xf32, #tpu.memory_space<vmem>>, vector<1x24xf32>
    %20 = vector.broadcast %19 : vector<1x24xf32> to vector<2x24xf32>
    %21 = arith.addf %18, %20 : vector<2x24xf32>
    %cst_17 = arith.constant 0.000000e+00 : f32
    %22 = vector.broadcast %cst_17 : f32 to vector<2x24xf32>
    %23 = arith.maximumf %21, %22 : vector<2x24xf32>
    %c0_18 = arith.constant 0 : index
    %c0_19 = arith.constant 0 : index
    %24 = vector.load %arg8[%c0_18, %c0_19] : memref<24x6xf32, #tpu.memory_space<vmem>>, vector<24x6xf32>
    %cst_20 = arith.constant dense<0.000000e+00> : vector<2x6xf32>
    %25 = tpu.matmul %23, %24, %cst_20 {dimension_numbers = #tpu.dot_dimension_numbers<[1], [0], [0], [1], [0, 0, 1, 1], [], []>} : vector<2x24xf32>, vector<24x6xf32>, vector<2x6xf32> -> vector<2x6xf32>
    %c0_21 = arith.constant 0 : index
    %c0_22 = arith.constant 0 : index
    %26 = vector.load %arg9[%c0_21, %c0_22] : memref<1x6xf32, #tpu.memory_space<vmem>>, vector<1x6xf32>
    %27 = vector.broadcast %26 : vector<1x6xf32> to vector<2x6xf32>
    %28 = arith.addf %25, %27 : vector<2x6xf32>
    %c0_23 = arith.constant 0 : index
    %c0_24 = arith.constant 0 : index
    %29 = vector.load %arg10[%c0_23, %c0_24] : memref<6x12xf32, #tpu.memory_space<vmem>>, vector<6x12xf32>
    %cst_25 = arith.constant dense<0.000000e+00> : vector<2x12xf32>
    %30 = tpu.matmul %28, %29, %cst_25 {dimension_numbers = #tpu.dot_dimension_numbers<[1], [0], [0], [1], [0, 0, 1, 1], [], []>} : vector<2x6xf32>, vector<6x12xf32>, vector<2x12xf32> -> vector<2x12xf32>
    %c0_26 = arith.constant 0 : index
    %c0_27 = arith.constant 0 : index
    %31 = vector.load %arg11[%c0_26, %c0_27] : memref<1x12xf32, #tpu.memory_space<vmem>>, vector<1x12xf32>
    %32 = vector.broadcast %31 : vector<1x12xf32> to vector<2x12xf32>
    %33 = arith.addf %30, %32 : vector<2x12xf32>
    %cst_28 = arith.constant 0.000000e+00 : f32
    %34 = vector.broadcast %cst_28 : f32 to vector<2x12xf32>
    %35 = arith.maximumf %33, %34 : vector<2x12xf32>
    %c0_29 = arith.constant 0 : index
    %c0_30 = arith.constant 0 : index
    %36 = vector.load %arg12[%c0_29, %c0_30] : memref<12x64xf32, #tpu.memory_space<vmem>>, vector<12x64xf32>
    %cst_31 = arith.constant dense<0.000000e+00> : vector<2x64xf32>
    %37 = tpu.matmul %35, %36, %cst_31 {dimension_numbers = #tpu.dot_dimension_numbers<[1], [0], [0], [1], [0, 0, 1, 1], [], []>} : vector<2x12xf32>, vector<12x64xf32>, vector<2x64xf32> -> vector<2x64xf32>
    %c0_32 = arith.constant 0 : index
    %c0_33 = arith.constant 0 : index
    %38 = vector.load %arg13[%c0_32, %c0_33] : memref<1x64xf32, #tpu.memory_space<vmem>>, vector<1x64xf32>
    %39 = vector.broadcast %38 : vector<1x64xf32> to vector<2x64xf32>
    %40 = arith.addf %37, %39 : vector<2x64xf32>
    %cst_34 = arith.constant 0.000000e+00 : f32
    %41 = vector.broadcast %cst_34 : f32 to vector<2x64xf32>
    %42 = arith.maximumf %40, %41 : vector<2x64xf32>
    %43 = arith.truncf %42 : vector<2x64xf32> to vector<2x64xbf16>
    %c0_35 = arith.constant 0 : index
    %c0_36 = arith.constant 0 : index
    %44 = vector.load %arg14[%c0_35, %c0_36] : memref<64x128xbf16, #tpu.memory_space<vmem>>, vector<64x128xbf16>
    %cst_37 = arith.constant dense<0.000000e+00> : vector<2x128xf32>
    %45 = tpu.matmul %43, %44, %cst_37 {dimension_numbers = #tpu.dot_dimension_numbers<[1], [0], [0], [1], [0, 0, 1, 1], [], []>} : vector<2x64xbf16>, vector<64x128xbf16>, vector<2x128xf32> -> vector<2x128xf32>
    %c0_38 = arith.constant 0 : index
    %c0_39 = arith.constant 0 : index
    %46 = vector.load %arg15[%c0_38, %c0_39] : memref<1x128xf32, #tpu.memory_space<vmem>>, vector<1x128xf32>
    %47 = vector.broadcast %46 : vector<1x128xf32> to vector<2x128xf32>
    %48 = arith.addf %45, %47 : vector<2x128xf32>
    %cst_40 = arith.constant 0.000000e+00 : f32
    %49 = vector.broadcast %cst_40 : f32 to vector<2x128xf32>
    %50 = arith.maximumf %48, %49 : vector<2x128xf32>
    %51 = arith.truncf %50 : vector<2x128xf32> to vector<2x128xbf16>
    %c0_41 = arith.constant 0 : index
    %c0_42 = arith.constant 0 : index
    %52 = vector.load %arg16[%c0_41, %c0_42] : memref<128x784xbf16, #tpu.memory_space<vmem>>, vector<128x784xbf16>
    %cst_43 = arith.constant dense<0.000000e+00> : vector<2x784xf32>
    %53 = tpu.matmul %51, %52, %cst_43 {dimension_numbers = #tpu.dot_dimension_numbers<[1], [0], [0], [1], [0, 0, 1, 1], [], []>} : vector<2x128xbf16>, vector<128x784xbf16>, vector<2x784xf32> -> vector<2x784xf32>
    %c0_44 = arith.constant 0 : index
    %c0_45 = arith.constant 0 : index
    %54 = vector.load %arg17[%c0_44, %c0_45] : memref<1x784xf32, #tpu.memory_space<vmem>>, vector<1x784xf32>
    %55 = vector.broadcast %54 : vector<1x784xf32> to vector<2x784xf32>
    %56 = arith.addf %53, %55 : vector<2x784xf32>
    %57 = math.tanh %56 : vector<2x784xf32>
    %c0_46 = arith.constant 0 : index
    %c0_47 = arith.constant 0 : index
    %58 = vector.load %arg18[%c0_46, %c0_47] : memref<2x784xf32, #tpu.memory_space<vmem>>, vector<2x784xf32>
    tpu.vector_store %arg18[%c0_46, %c0_47], %57 {strides = array<i32>} : memref<2x784xf32, #tpu.memory_space<vmem>>, vector<2x784xf32>,
    return
  }
  func.func @transform_0(%arg0: i32) -> (i32, i32) {
    %c0_i32 = arith.constant 0 : i32
    %c0_i32_0 = arith.constant 0 : i32
    return %arg0, %c0_i32 : i32, i32
  }
  func.func @transform_1(%arg0: i32) -> (i32, i32) {
    %c0_i32 = arith.constant 0 : i32
    %c0_i32_0 = arith.constant 0 : i32
    %c0_i32_1 = arith.constant 0 : i32
    return %c0_i32, %c0_i32_0 : i32, i32
  }
  func.func @transform_2(%arg0: i32) -> (i32, i32) {
    %c0_i32 = arith.constant 0 : i32
    %c0_i32_0 = arith.constant 0 : i32
    %c0_i32_1 = arith.constant 0 : i32
    return %c0_i32, %c0_i32_0 : i32, i32
  }
  func.func @transform_3(%arg0: i32) -> (i32, i32) {
    %c0_i32 = arith.constant 0 : i32
    %c0_i32_0 = arith.constant 0 : i32
    %c0_i32_1 = arith.constant 0 : i32
    return %c0_i32, %c0_i32_0 : i32, i32
  }
  func.func @transform_4(%arg0: i32) -> (i32, i32) {
    %c0_i32 = arith.constant 0 : i32
    %c0_i32_0 = arith.constant 0 : i32
    %c0_i32_1 = arith.constant 0 : i32
    return %c0_i32, %c0_i32_0 : i32, i32
  }
  func.func @transform_5(%arg0: i32) -> (i32, i32) {
    %c0_i32 = arith.constant 0 : i32
    %c0_i32_0 = arith.constant 0 : i32
    %c0_i32_1 = arith.constant 0 : i32
    return %c0_i32, %c0_i32_0 : i32, i32
  }
  func.func @transform_6(%arg0: i32) -> (i32, i32) {
    %c0_i32 = arith.constant 0 : i32
    %c0_i32_0 = arith.constant 0 : i32
    %c0_i32_1 = arith.constant 0 : i32
    return %c0_i32, %c0_i32_0 : i32, i32
  }
  func.func @transform_7(%arg0: i32) -> (i32, i32) {
    %c0_i32 = arith.constant 0 : i32
    %c0_i32_0 = arith.constant 0 : i32
    %c0_i32_1 = arith.constant 0 : i32
    return %c0_i32, %c0_i32_0 : i32, i32
  }
  func.func @transform_8(%arg0: i32) -> (i32, i32) {
    %c0_i32 = arith.constant 0 : i32
    %c0_i32_0 = arith.constant 0 : i32
    %c0_i32_1 = arith.constant 0 : i32
    return %c0_i32, %c0_i32_0 : i32, i32
  }
  func.func @transform_9(%arg0: i32) -> (i32, i32) {
    %c0_i32 = arith.constant 0 : i32
    %c0_i32_0 = arith.constant 0 : i32
    %c0_i32_1 = arith.constant 0 : i32
    return %c0_i32, %c0_i32_0 : i32, i32
  }
  func.func @transform_10(%arg0: i32) -> (i32, i32) {
    %c0_i32 = arith.constant 0 : i32
    %c0_i32_0 = arith.constant 0 : i32
    %c0_i32_1 = arith.constant 0 : i32
    return %c0_i32, %c0_i32_0 : i32, i32
  }
  func.func @transform_11(%arg0: i32) -> (i32, i32) {
    %c0_i32 = arith.constant 0 : i32
    %c0_i32_0 = arith.constant 0 : i32
    %c0_i32_1 = arith.constant 0 : i32
    return %c0_i32, %c0_i32_0 : i32, i32
  }
  func.func @transform_12(%arg0: i32) -> (i32, i32) {
    %c0_i32 = arith.constant 0 : i32
    %c0_i32_0 = arith.constant 0 : i32
    %c0_i32_1 = arith.constant 0 : i32
    return %c0_i32, %c0_i32_0 : i32, i32
  }
  func.func @transform_13(%arg0: i32) -> (i32, i32) {
    %c0_i32 = arith.constant 0 : i32
    %c0_i32_0 = arith.constant 0 : i32
    %c0_i32_1 = arith.constant 0 : i32
    return %c0_i32, %c0_i32_0 : i32, i32
  }
  func.func @transform_14(%arg0: i32) -> (i32, i32) {
    %c0_i32 = arith.constant 0 : i32
    %c0_i32_0 = arith.constant 0 : i32
    %c0_i32_1 = arith.constant 0 : i32
    return %c0_i32, %c0_i32_0 : i32, i32
  }
  func.func @transform_15(%arg0: i32) -> (i32, i32) {
    %c0_i32 = arith.constant 0 : i32
    %c0_i32_0 = arith.constant 0 : i32
    %c0_i32_1 = arith.constant 0 : i32
    return %c0_i32, %c0_i32_0 : i32, i32
  }
  func.func @transform_16(%arg0: i32) -> (i32, i32) {
    %c0_i32 = arith.constant 0 : i32
    %c0_i32_0 = arith.constant 0 : i32
    %c0_i32_1 = arith.constant 0 : i32
    return %c0_i32, %c0_i32_0 : i32, i32
  }
  func.func @transform_17(%arg0: i32) -> (i32, i32) {
    %c0_i32 = arith.constant 0 : i32
    %c0_i32_0 = arith.constant 0 : i32
    return %arg0, %c0_i32 : i32, i32
  }
}

</mosaic_0001>

<bundles_post_ra>
// kernel: tpu_custom_call.1
= control target key start
LH: loop header
LB: loop body
LE: loop exit
PB: predicated region body
PF: predicated region fallthrough
CT: control target
= control target key end

     0   :  { %s3602_s0 = inlined_call_operand.vmem [shape: f32[2,784], index: 0, kind: input, shape index: {}]   ;;  %s3603_s1 = inlined_call_operand.vmem [shape: bf16[784,256], index: 1, kind: input, shape index: {}]   ;;  %s3604_s2 = inlined_call_operand.vmem [shape: f32[1,256], index: 2, kind: input, shape index: {}]   ;;  %s3605_s3 = inlined_call_operand.vmem [shape: bf16[256,128], index: 3, kind: input, shape index: {}]   ;;  %s3606_s4 = inlined_call_operand.vmem [shape: f32[1,128], index: 4, kind: input, shape index: {}]   ;;  %s3607_s5 = inlined_call_operand.vmem [shape: f32[128,24], index: 5, kind: input, shape index: {}]   ;;  %s3608_s6 = inlined_call_operand.vmem [shape: f32[1,24], index: 6, kind: input, shape index: {}]   ;;  %s3609_s7 = inlined_call_operand.vmem [shape: f32[24,6], index: 7, kind: input, shape index: {}]   ;;  %s3610_s8 = inlined_call_operand.vmem [shape: f32[1,6], index: 8, kind: input, shape index: {}]   ;;  %s3611_s9 = inlined_call_operand.vmem [shape: f32[6,12], index: 9, kind: input, shape index: {}]   ;;  %s3612_s10 = inlined_call_operand.vmem [shape: f32[1,12], index: 10, kind: input, shape index: {}]   ;;  %s3613_s11 = inlined_call_operand.vmem [shape: f32[12,64], index: 11, kind: input, shape index: {}]   ;;  %s3614_s12 = inlined_call_operand.vmem [shape: f32[1,64], index: 12, kind: input, shape index: {}]   ;;  %s3615_s13 = inlined_call_operand.vmem [shape: bf16[64,128], index: 13, kind: input, shape index: {}]   ;;  %s3616_s14 = inlined_call_operand.vmem [shape: f32[1,128], index: 14, kind: input, shape index: {}]   ;;  %s3617_s15 = inlined_call_operand.vmem [shape: bf16[128,784], index: 15, kind: input, shape index: {}]   ;;  %s3618_s16 = inlined_call_operand.vmem [shape: f32[1,784], index: 16, kind: input, shape index: {}]   ;;  %s3619_s17 = inlined_call_operand.hbm [shape: f32[2,784], index: 17, kind: output, shape index: {}]  }
   0x1   :  { %3622 = sst [smem:[#allocation5_spill]] %s3602_s0 }
   0x2   :  { %3623 = sst [smem:[#allocation6_spill]] %s3603_s1 }
   0x3   :  { %s3624_s26 = sld [smem:[#allocation6_spill]]  ;;  %v2794_v7 = vmov 1983009808   ;;  %v66_v9 = vlaneseq  ;;  %s3625_s24 = sld [smem:[#allocation5_spill]]  ;;  %v2656_v56 = vld [vmem:[%s3605_s3 + $0x40] sm:$0xff]   ;;  %v2658_v58 = vld [vmem:[%s3605_s3 + $0x48] sm:$0xff]  }
   0x4   :  { %v64_v8 = vunpack.c.l.s4 %v2794_v7  ;;  %v2657_v57 = vld [vmem:[%s3605_s3] sm:$0xff]   ;;  %2305 = vmatprep.subr.bf16.mxu1 %v2656_v56  ;;  %v2659_v62 = vld [vmem:[%s3605_s3 + $0x8] sm:$0xff]  }
   0x5   :  { %v2918_v13 = vshrl.u32 %v66_v9, 7  ;;  %2306 = vmatpush3.bf16.msra.mxu1 %v2657_v57  ;;  %v2665_v9 = vld [vmem:[%s3605_s3 + $0x20] sm:$0xff]  }
   0x6   :  { %v65_v12 = vunpack.c.0.s8 %v64_v8  ;;  %2307 = vmatprep.subr.bf16.mxu1 %v2658_v58 }
   0x8   :  { %v2927_v16 = vsub.s32 %v65_v12, %v2918_v13 }
   0x9   :  { %v2507_v0 = vld [vmem:[%s3624_s26 + $0x4] ss:$8 sps:$4 sm:$0xff]   ;;  %v2509_v1 = vld [vmem:[%s3624_s26] ss:$8 sps:$4 sm:$0xff]   ;;  %v2510_v2 = vld [vmem:[%s3624_s26 + $0x14] ss:$8 sps:$4 sm:$0xff]   ;;  %2308 = vmatpush3.bf16.msra.mxu1 %v2659_v62 }
   0xa   :  { %713 = vmatprep.subr.bf16.mxu0 %v2507_v0  ;;  %v2512_v3 = vld [vmem:[%s3624_s26 + $0x10] ss:$8 sps:$4 sm:$0xff]   ;;  %v2513_v4 = vld [vmem:[%s3624_s26 + $0x24] ss:$8 sps:$4 sm:$0xff]   ;;  %v2515_v5 = vld [vmem:[%s3624_s26 + $0x20] ss:$8 sps:$4 sm:$0xff]  }
   0xb   :  { %714 = vmatpush1.bf16.msra.mxu0 %v2509_v1  ;;  %v2516_v6 = vld [vmem:[%s3624_s26 + $0x34] ss:$8 sps:$4 sm:$0xff]   ;;  %v2518_v10 = vld [vmem:[%s3624_s26 + $0x30] ss:$8 sps:$4 sm:$0xff]   ;;  %v2519_v11 = vld [vmem:[%s3624_s26 + $0x44] ss:$8 sps:$4 sm:$0xff]  }
   0xc   :  { %715 = vmatprep.subr.bf16.mxu0 %v2510_v2  ;;  %v2521_v14 = vld [vmem:[%s3624_s26 + $0x40] ss:$8 sps:$4 sm:$0xff]   ;;  %v2522_v15 = vld [vmem:[%s3624_s26 + $0x54] ss:$8 sps:$4 sm:$0xff]   ;;  %v2524_v17 = vld [vmem:[%s3624_s26 + $0x50] ss:$8 sps:$4 sm:$0xff]  }
   0xd   :  { %v2525_v18 = vld [vmem:[%s3624_s26 + $0x64] ss:$8 sps:$4 sm:$0xff]   ;;  %v2527_v21 = vld [vmem:[%s3624_s26 + $0x60] ss:$8 sps:$4 sm:$0xff]   ;;  %v2528_v22 = vld [vmem:[%s3624_s26 + $0x74] ss:$8 sps:$4 sm:$0xff]  }
   0xe   :  { %v58_v19 = vld [vmem:[%s3625_s24] sm:$0xff]  ;;  %v2530_v25 = vld [vmem:[%s3624_s26 + $0x70] ss:$8 sps:$4 sm:$0xff]   ;;  %v2534_v28 = vld [vmem:[%s3624_s26 + $0x94] ss:$8 sps:$4 sm:$0xff]  }
   0xf   :  { %716 = vmatpush1.bf16.msra.mxu0 %v2512_v3  ;;  %v69_v20 = vrot.slane %v58_v19, %v2927_v16  ;;  %v2531_v26 = vld [vmem:[%s3624_s26 + $0x84] ss:$8 sps:$4 sm:$0xff]   ;;  %v2533_v27 = vld [vmem:[%s3624_s26 + $0x80] ss:$8 sps:$4 sm:$0xff]   ;;  %v2536_v29 = vld [vmem:[%s3624_s26 + $0x90] ss:$8 sps:$4 sm:$0xff]   ;;  %v62_v38 = vcombine.high %v58_v19, %v58_v19 }
  0x10   :  { %717 = vmatprep.subr.bf16.mxu0 %v2513_v4  ;;  %v2537_v30 = vld [vmem:[%s3624_s26 + $0xa4] ss:$8 sps:$4 sm:$0xff]   ;;  %v2539_v31 = vld [vmem:[%s3624_s26 + $0xa0] ss:$8 sps:$4 sm:$0xff]   ;;  %v2540_v32 = vld [vmem:[%s3624_s26 + $0xb4] ss:$8 sps:$4 sm:$0xff]  }
  0x11   :  { %v77_v23 = vcombine.high %v69_v20, %v69_v20  ;;  %v2542_v33 = vld [vmem:[%s3624_s26 + $0xb0] ss:$8 sps:$4 sm:$0xff]   ;;  %v2543_v34 = vld [vmem:[%s3624_s26 + $0xc4] ss:$8 sps:$4 sm:$0xff]   ;;  %v2545_v35 = vld [vmem:[%s3624_s26 + $0xc0] ss:$8 sps:$4 sm:$0xff]   ;;  %v2991_v41 = vrot.slane %v62_v38, %v2927_v16  ;;  %v102_v46 = vpack.c.bf16 %v69_v20, %v69_v20 }
  0x12   :  { %v2546_v36 = vld [vmem:[%s3624_s26 + $0xd4] ss:$8 sps:$4 sm:$0xff]   ;;  %v2548_v37 = vld [vmem:[%s3624_s26 + $0xd0] ss:$8 sps:$4 sm:$0xff]   ;;  %v2549_v39 = vld [vmem:[%s3624_s26 + $0xe4] ss:$8 sps:$4 sm:$0xff]  }
  0x13   :  { %718 = vmatpush1.bf16.msra.mxu0 %v2515_v5  ;;  %v103_v24 = vpack.c.bf16 %v77_v23, %v77_v23  ;;  %v2551_v40 = vld [vmem:[%s3624_s26 + $0xe0] ss:$8 sps:$4 sm:$0xff]   ;;  %v2552_v42 = vld [vmem:[%s3624_s26 + $0xf4] ss:$8 sps:$4 sm:$0xff]   ;;  %v2554_v43 = vld [vmem:[%s3624_s26 + $0xf0] ss:$8 sps:$4 sm:$0xff]   ;;  %v78_v44 = vcombine.high %v2991_v41, %v2991_v41 }
  0x14   :  { %719 = vmatprep.subr.bf16.mxu0 %v2516_v6  ;;  %v2558_v45 = vld [vmem:[%s3624_s26 + $0x104] ss:$8 sps:$4 sm:$0xff]   ;;  %v2556_v47 = vld [vmem:[%s3624_s26 + $0x100] ss:$8 sps:$4 sm:$0xff]   ;;  %v2561_v49 = vld [vmem:[%s3624_s26 + $0x114] ss:$8 sps:$4 sm:$0xff]  }
  0x15   :  { %745 = vmatprep.mubr.bf16.mxu0 %v103_v24  ;;  %v105_v48 = vpack.c.bf16 %v78_v44, %v78_v44  ;;  %v2559_v50 = vld [vmem:[%s3624_s26 + $0x110] ss:$8 sps:$4 sm:$0xff]   ;;  %v2564_v51 = vld [vmem:[%s3624_s26 + $0x124] ss:$8 sps:$4 sm:$0xff]   ;;  %v2562_v52 = vld [vmem:[%s3624_s26 + $0x120] ss:$8 sps:$4 sm:$0xff]  }
  0x16   :  { %v2567_v53 = vld [vmem:[%s3624_s26 + $0x134] ss:$8 sps:$4 sm:$0xff]   ;;  %v2565_v54 = vld [vmem:[%s3624_s26 + $0x130] ss:$8 sps:$4 sm:$0xff]   ;;  %v2570_v55 = vld [vmem:[%s3624_s26 + $0x144] ss:$8 sps:$4 sm:$0xff]  }
  0x17   :  { %720 = vmatpush1.bf16.msra.mxu0 %v2518_v10  ;;  %v2568_v59 = vld [vmem:[%s3624_s26 + $0x140] ss:$8 sps:$4 sm:$0xff]   ;;  %v2573_v60 = vld [vmem:[%s3624_s26 + $0x154] ss:$8 sps:$4 sm:$0xff]   ;;  %v2571_v61 = vld [vmem:[%s3624_s26 + $0x150] ss:$8 sps:$4 sm:$0xff]  }
  0x18   :  { %721 = vmatprep.subr.bf16.mxu0 %v2519_v11  ;;  %v2576_v63 = vld [vmem:[%s3624_s26 + $0x164] ss:$8 sps:$4 sm:$0xff]   ;;  %v2660_v0 = vld [vmem:[%s3605_s3 + $0x50] sm:$0xff]   ;;  %v2662_v2 = vld [vmem:[%s3605_s3 + $0x58] sm:$0xff]  }
  0x19   :  { %v2661_v1 = vld [vmem:[%s3605_s3 + $0x10] sm:$0xff]   ;;  %v2574_v3 = vld [vmem:[%s3624_s26 + $0x160] ss:$8 sps:$4 sm:$0xff]   ;;  %2309 = vmatprep.subr.bf16.mxu1 %v2660_v0  ;;  %v2663_v5 = vld [vmem:[%s3605_s3 + $0x18] sm:$0xff]  }
  0x1a   :  { %v2579_v4 = vld [vmem:[%s3624_s26 + $0x174] ss:$8 sps:$4 sm:$0xff]   ;;  %v2664_v6 = vld [vmem:[%s3605_s3 + $0x60] sm:$0xff]   ;;  %v2577_v7 = vld [vmem:[%s3624_s26 + $0x170] ss:$8 sps:$4 sm:$0xff]   ;;  %2310 = vmatpush3.bf16.msra.mxu1 %v2661_v1 }
  0x1b   :  { %722 = vmatpush1.bf16.msra.mxu0 %v2521_v14  ;;  %v2582_v8 = vld [vmem:[%s3624_s26 + $0x184] ss:$8 sps:$4 sm:$0xff]   ;;  %2311 = vmatprep.subr.bf16.mxu1 %v2662_v2  ;;  %v2580_v11 = vld [vmem:[%s3624_s26 + $0x180] ss:$8 sps:$4 sm:$0xff]   ;;  %v2585_v12 = vld [vmem:[%s3624_s26 + $0x194] ss:$8 sps:$4 sm:$0xff]  }
  0x1c   :  { %723 = vmatprep.subr.bf16.mxu0 %v2522_v15  ;;  %v2666_v10 = vld [vmem:[%s3605_s3 + $0x68] sm:$0xff]   ;;  %v2583_v15 = vld [vmem:[%s3624_s26 + $0x190] ss:$8 sps:$4 sm:$0xff]   ;;  %v2591_v19 = vld [vmem:[%s3624_s26 + $0x1b4] ss:$8 sps:$4 sm:$0xff]  }
  0x1d   :  { %v2667_v14 = vld [vmem:[%s3605_s3 + $0x28] sm:$0xff]  }
  0x1e   :  { %2312 = vmatpush3.bf16.msra.mxu1 %v2663_v5 }
  0x1f   :  { %724 = vmatpush1.bf16.msra.mxu0 %v2524_v17  ;;  %2313 = vmatprep.subr.bf16.mxu1 %v2664_v6  ;;  %v2588_v17 = vld [vmem:[%s3624_s26 + $0x1a4] ss:$8 sps:$4 sm:$0xff]  }
  0x20   :  { %725 = vmatprep.subr.bf16.mxu0 %v2525_v18  ;;  %v2586_v18 = vld [vmem:[%s3624_s26 + $0x1a0] ss:$8 sps:$4 sm:$0xff]  }
  0x22   :  { %2314 = vmatpush3.bf16.msra.mxu1 %v2665_v9 }
  0x23   :  { %726 = vmatpush1.bf16.msra.mxu0 %v2527_v21  ;;  %2315 = vmatprep.subr.bf16.mxu1 %v2666_v10 }
  0x24   :  { %727 = vmatprep.subr.bf16.mxu0 %v2528_v22 }
  0x26   :  { %2316 = vmatpush3.bf16.msra.mxu1 %v2667_v14 }
  0x27   :  { %728 = vmatpush1.bf16.msra.mxu0 %v2530_v25 }
  0x28   :  { %729 = vmatprep.subr.bf16.mxu0 %v2531_v26 }
  0x2b   :  { %730 = vmatpush1.bf16.msra.mxu0 %v2533_v27 }
  0x2c   :  { %731 = vmatprep.subr.bf16.mxu0 %v2534_v28 }
  0x2f   :  { %732 = vmatpush1.bf16.msra.mxu0 %v2536_v29 }
  0x30   :  { %733 = vmatprep.subr.bf16.mxu0 %v2537_v30 }
  0x33   :  { %734 = vmatpush1.bf16.msra.mxu0 %v2539_v31 }
  0x34   :  { %735 = vmatprep.subr.bf16.mxu0 %v2540_v32 }
  0x37   :  { %736 = vmatpush1.bf16.msra.mxu0 %v2542_v33 }
  0x38   :  { %737 = vmatprep.subr.bf16.mxu0 %v2543_v34 }
  0x3b   :  { %738 = vmatpush1.bf16.msra.mxu0 %v2545_v35 }
  0x3c   :  { %739 = vmatprep.subr.bf16.mxu0 %v2546_v36 }
  0x3f   :  { %740 = vmatpush1.bf16.msra.mxu0 %v2548_v37 }
  0x40   :  { %741 = vmatprep.subr.bf16.mxu0 %v2549_v39 }
  0x43   :  { %742 = vmatpush1.bf16.msra.mxu0 %v2551_v40 }
  0x44   :  { %743 = vmatprep.subr.bf16.mxu0 %v2552_v42 }
  0x47   :  { %744 = vmatpush1.bf16.msra.mxu0 %v2554_v43 }
  0x48   :  { %754 = vmatprep.subr.bf16.mxu0 %v2558_v45 }
  0x4a   :  { %746 = vmatmul.mubr.bf16.vlgmr.msra.gmra.mrb[0].mxu0 %v102_v46 }
  0x4b   :  { %755 = vmatpush1.bf16.msra.mxu0 %v2556_v47  ;;  %786 = vmatprep.mubr.bf16.mxu0 %v105_v48 }
  0x4c   :  { %756 = vmatprep.subr.bf16.mxu0 %v2561_v49 }
  0x4f   :  { %757 = vmatpush1.bf16.msra.mxu0 %v2559_v50 }
  0x50   :  { %758 = vmatprep.subr.bf16.mxu0 %v2564_v51 }
  0x53   :  { %759 = vmatpush1.bf16.msra.mxu0 %v2562_v52 }
  0x54   :  { %760 = vmatprep.subr.bf16.mxu0 %v2567_v53 }
  0x57   :  { %761 = vmatpush1.bf16.msra.mxu0 %v2565_v54 }
  0x58   :  { %762 = vmatprep.subr.bf16.mxu0 %v2570_v55 }
  0x5b   :  { %763 = vmatpush1.bf16.msra.mxu0 %v2568_v59 }
  0x5c   :  { %764 = vmatprep.subr.bf16.mxu0 %v2573_v60 }
  0x5f   :  { %765 = vmatpush1.bf16.msra.mxu0 %v2571_v61 }
  0x60   :  { %766 = vmatprep.subr.bf16.mxu0 %v2576_v63 }
  0x63   :  { %767 = vmatpush1.bf16.msra.mxu0 %v2574_v3 }
  0x64   :  { %768 = vmatprep.subr.bf16.mxu0 %v2579_v4 }
  0x67   :  { %769 = vmatpush1.bf16.msra.mxu0 %v2577_v7 }
  0x68   :  { %770 = vmatprep.subr.bf16.mxu0 %v2582_v8 }
  0x6b   :  { %771 = vmatpush1.bf16.msra.mxu0 %v2580_v11 }
  0x6c   :  { %772 = vmatprep.subr.bf16.mxu0 %v2585_v12 }
  0x6f   :  { %773 = vmatpush1.bf16.msra.mxu0 %v2583_v15 }
  0x70   :  { %774 = vmatprep.subr.bf16.mxu0 %v2588_v17 }
  0x71   :  { %22 = vsyncpa [#allocation3], 0  ;;  %v2589_v20 = vld [vmem:[%s3624_s26 + $0x1b0] ss:$8 sps:$4 sm:$0xff]   ;;  %v2594_v21 = vld [vmem:[%s3624_s26 + $0x1c4] ss:$8 sps:$4 sm:$0xff]   ;;  %v104_v33 = vpack.c.bf16 %v2991_v41, %v2991_v41 }
  0x72   :  { %v2592_v22 = vld [vmem:[%s3624_s26 + $0x1c0] ss:$8 sps:$4 sm:$0xff]   ;;  %v2597_v23 = vld [vmem:[%s3624_s26 + $0x1d4] ss:$8 sps:$4 sm:$0xff]   ;;  %v2595_v24 = vld [vmem:[%s3624_s26 + $0x1d0] ss:$8 sps:$4 sm:$0xff]  }
  0x73   :  { %775 = vmatpush1.bf16.msra.mxu0 %v2586_v18  ;;  %v2600_v25 = vld [vmem:[%s3624_s26 + $0x1e4] ss:$8 sps:$4 sm:$0xff]   ;;  %v2598_v27 = vld [vmem:[%s3624_s26 + $0x1e0] ss:$8 sps:$4 sm:$0xff]   ;;  %v2603_v29 = vld [vmem:[%s3624_s26 + $0x1f4] ss:$8 sps:$4 sm:$0xff]  }
  0x74   :  { %776 = vmatprep.subr.bf16.mxu0 %v2591_v19  ;;  %v3127_v26 = vld [vmem:[%s3625_s24 + $0x8] sm:$0x3f]  ;;  %v2601_v30 = vld [vmem:[%s3624_s26 + $0x1f0] ss:$8 sps:$4 sm:$0xff]   ;;  %v2609_v36 = vld [vmem:[%s3624_s26 + $0x214] ss:$8 sps:$4 sm:$0xff]  }
  0x75   :  { %v3134_v28 = vrot.slane %v3127_v26, %v2927_v16  ;;  %v2606_v32 = vld [vmem:[%s3624_s26 + $0x204] ss:$8 sps:$4 sm:$0xff]   ;;  %v2604_v34 = vld [vmem:[%s3624_s26 + $0x200] ss:$8 sps:$4 sm:$0xff]   ;;  %v2607_v37 = vld [vmem:[%s3624_s26 + $0x210] ss:$8 sps:$4 sm:$0xff]   ;;  %v79_v5 = vcombine.high %v3127_v26, %v3127_v26 }
  0x76   :  { %v2612_v38 = vld [vmem:[%s3624_s26 + $0x224] ss:$8 sps:$4 sm:$0xff]   ;;  %v2610_v39 = vld [vmem:[%s3624_s26 + $0x220] ss:$8 sps:$4 sm:$0xff]   ;;  %v2615_v40 = vld [vmem:[%s3624_s26 + $0x234] ss:$8 sps:$4 sm:$0xff]  }
  0x77   :  { %777 = vmatpush1.bf16.msra.mxu0 %v2589_v20  ;;  %v94_v31 = vcombine.high %v3134_v28, %v3134_v28  ;;  %v2613_v41 = vld [vmem:[%s3624_s26 + $0x230] ss:$8 sps:$4 sm:$0xff]   ;;  %v2618_v42 = vld [vmem:[%s3624_s26 + $0x244] ss:$8 sps:$4 sm:$0xff]   ;;  %v2616_v43 = vld [vmem:[%s3624_s26 + $0x240] ss:$8 sps:$4 sm:$0xff]   ;;  %v106_v3 = vpack.c.bf16 %v3134_v28, %v3134_v28  ;;  %v93_v7 = vrot.slane %v79_v5, %v2927_v16 }
  0x78   :  { %778 = vmatprep.subr.bf16.mxu0 %v2594_v21  ;;  %v2621_v44 = vld [vmem:[%s3624_s26 + $0x254] ss:$8 sps:$4 sm:$0xff]   ;;  %v2619_v45 = vld [vmem:[%s3624_s26 + $0x250] ss:$8 sps:$4 sm:$0xff]   ;;  %v2624_v46 = vld [vmem:[%s3624_s26 + $0x264] ss:$8 sps:$4 sm:$0xff]  }
  0x79   :  { %v107_v35 = vpack.c.bf16 %v94_v31, %v94_v31  ;;  %v2622_v47 = vld [vmem:[%s3624_s26 + $0x260] ss:$8 sps:$4 sm:$0xff]   ;;  %v2627_v48 = vld [vmem:[%s3624_s26 + $0x274] ss:$8 sps:$4 sm:$0xff]   ;;  %v2625_v49 = vld [vmem:[%s3624_s26 + $0x270] ss:$8 sps:$4 sm:$0xff]   ;;  %v108_v8 = vpack.c.bf16 %v93_v7, %v93_v7 }
  0x7a   :  { %v2630_v50 = vld [vmem:[%s3624_s26 + $0x284] ss:$8 sps:$4 sm:$0xff]   ;;  %v2628_v51 = vld [vmem:[%s3624_s26 + $0x280] ss:$8 sps:$4 sm:$0xff]   ;;  %v2633_v52 = vld [vmem:[%s3624_s26 + $0x294] ss:$8 sps:$4 sm:$0xff]  }
  0x7b   :  { %779 = vmatpush1.bf16.msra.mxu0 %v2592_v22  ;;  %v2631_v53 = vld [vmem:[%s3624_s26 + $0x290] ss:$8 sps:$4 sm:$0xff]   ;;  %v2636_v54 = vld [vmem:[%s3624_s26 + $0x2a4] ss:$8 sps:$4 sm:$0xff]   ;;  %v2634_v55 = vld [vmem:[%s3624_s26 + $0x2a0] ss:$8 sps:$4 sm:$0xff]  }
  0x7c   :  { %780 = vmatprep.subr.bf16.mxu0 %v2597_v23  ;;  %v2639_v56 = vld [vmem:[%s3624_s26 + $0x2b4] ss:$8 sps:$4 sm:$0xff]   ;;  %v2637_v57 = vld [vmem:[%s3624_s26 + $0x2b0] ss:$8 sps:$4 sm:$0xff]   ;;  %v2642_v58 = vld [vmem:[%s3624_s26 + $0x2c4] ss:$8 sps:$4 sm:$0xff]  }
  0x7d   :  { %v2640_v59 = vld [vmem:[%s3624_s26 + $0x2c0] ss:$8 sps:$4 sm:$0xff]   ;;  %v2645_v60 = vld [vmem:[%s3624_s26 + $0x2d4] ss:$8 sps:$4 sm:$0xff]   ;;  %v2643_v61 = vld [vmem:[%s3624_s26 + $0x2d0] ss:$8 sps:$4 sm:$0xff]  }
  0x7e   :  { %v2648_v62 = vld [vmem:[%s3624_s26 + $0x2e4] ss:$8 sps:$4 sm:$0xff]   ;;  %v2646_v63 = vld [vmem:[%s3624_s26 + $0x2e0] ss:$8 sps:$4 sm:$0xff]   ;;  %v2651_v0 = vld [vmem:[%s3624_s26 + $0x2f4] ss:$8 sps:$4 sm:$0xff]  }
  0x7f   :  { %781 = vmatpush1.bf16.msra.mxu0 %v2595_v24  ;;  %v2649_v1 = vld [vmem:[%s3624_s26 + $0x2f0] ss:$8 sps:$4 sm:$0xff]   ;;  %v2655_v2 = vld [vmem:[%s3624_s26 + $0x304] ss:$8 sps:$4 sm:$0xff]   ;;  %v2653_v4 = vld [vmem:[%s3624_s26 + $0x300] ss:$8 sps:$4 sm:$0xff]  }
  0x80   :  { %782 = vmatprep.subr.bf16.mxu0 %v2600_v25  ;;  %v2795_v6 = vmov 0   ;;  %vm709_vm0 = vcmask 130048   ;;  %v2668_v9 = vld [vmem:[%s3605_s3 + $0x70] sm:$0xff]   ;;  %v2670_v11 = vld [vmem:[%s3605_s3 + $0x78] sm:$0xff]   ;;  %v2796_v14 = vmov 0.0|0.0   ;;  %v211_v15 = vsub.s32 0, %v2918_v13 }
  0x81   :  { %v2669_v10 = vld [vmem:[%s3605_s3 + $0x30] sm:$0xff]   ;;  %2317 = vmatprep.subr.bf16.mxu1 %v2668_v9  ;;  %v2671_v12 = vld [vmem:[%s3605_s3 + $0x38] sm:$0xff]   ;;  %v207_v17 = vld [vmem:[%s3604_s2] sm:$0x3]  ;;  %v215_v18 = vsub.s32 1, %v2918_v13  ;;  %vm2797_vm1 = vmmov 0  }
  0x82   :  { %2318 = vmatpush3.bf16.msra.mxu1 %v2669_v10  ;;  %v212_v19 = vrot.slane %v207_v17, %v211_v15  ;;  %v1057_v28 = vld [vmem:[%s3607_s5] sm:$0xff]  ;;  %vm1161_vm2 = vcmask 195584   ;;  %vm1247_vm3 = vcmask 1045504   ;;  %vm1243_vm4 = vcmask 48128  }
  0x83   :  { %783 = vmatpush1.bf16.msra.mxu0 %v2598_v27  ;;  %2319 = vmatprep.subr.bf16.mxu1 %v2670_v11  ;;  %v216_v20 = vrot.slane %v207_v17, %v215_v18  ;;  %v1235_v10 = vld [vmem:[%s3611_s9] sm:$0x3f]  ;;  %vm1335_vm5 = vcmask 1043456   ;;  %vm2799_vm6 = vmmov 1   ;;  %vm1331_vm8 = vcmask 97280  }
  0x84   :  { %784 = vmatprep.subr.bf16.mxu0 %v2603_v29  ;;  %v1058_v29 = vld [vmem:[%s3607_s5 + $0x8] sm:$0xff]  ;;  %v2235_v11 = vld [vmem:[%s3610_s8] ss:$0 sm:$0xff]  ;;  %vm2484_vm7 = vmpackc.low %vm1335_vm5, %vm2799_vm6  ;;  %vm1450_vm9 = vcmask 523264   ;;  %vm2098_vm10 = vcmask 1041408   ;;  %vm2099_vm11 = vcmask 1043458  }
  0x85   :  { %vm2100_vm12 = vmor %vm2099_vm11, %vm2098_vm10  ;;  %vm2101_vm13 = vcmask 128004  }
  0x86   :  { %2320 = vmatpush3.bf16.msra.mxu1 %v2671_v12  ;;  %vm2102_vm14 = vmor %vm2101_vm13, %vm2100_vm12 }
  0x87   :  { %785 = vmatpush1.bf16.msra.mxu0 %v2601_v30  ;;  %2455 = vmatprep.subr.bf16.mxu1 %v2796_v14 }
  0x88   :  { %795 = vmatprep.subr.bf16.mxu0 %v2606_v32  ;;  %v2456_v32 = vpack.c.bf16 %v1058_v29, %v1057_v28  ;;  %v2673_v28 = vld [vmem:[%s3615_s13 + $0x8] sm:$0xff]   ;;  %v2674_v29 = vld [vmem:[%s3615_s13 + $0x10] sm:$0xff]  }
  0x8a   :  { %787 = vmatmul.mubr.bf16.vlgmr.msra.gmra.mrb[0].mxu0 %v104_v33 }
  0x8b   :  { %796 = vmatpush1.bf16.msra.mxu0 %v2604_v34  ;;  %827 = vmatprep.mubr.bf16.mxu0 %v107_v35  ;;  %v1059_v34 = vld [vmem:[%s3607_s5 + $0x10] sm:$0xff]  ;;  %v1060_v35 = vld [vmem:[%s3607_s5 + $0x18] sm:$0xff] }
  0x8c   :  { %797 = vmatprep.subr.bf16.mxu0 %v2609_v36  ;;  %v2459_v36 = vpack.c.bf16 %v1060_v35, %v1059_v34 }
  0x8f   :  { %798 = vmatpush1.bf16.msra.mxu0 %v2607_v37  ;;  %v1061_v37 = vld [vmem:[%s3607_s5 + $0x20] sm:$0xff] }
  0x90   :  { %799 = vmatprep.subr.bf16.mxu0 %v2612_v38  ;;  %v1062_v38 = vld [vmem:[%s3607_s5 + $0x28] sm:$0xff] }
  0x93   :  { %800 = vmatpush1.bf16.msra.mxu0 %v2610_v39  ;;  %v2462_v39 = vpack.c.bf16 %v1062_v38, %v1061_v37  ;;  %v2676_v37 = vld [vmem:[%s3617_s15] ss:$28 sps:$4 sm:$0xff]  }
  0x94   :  { %801 = vmatprep.subr.bf16.mxu0 %v2615_v40  ;;  %v1063_v40 = vld [vmem:[%s3607_s5 + $0x30] sm:$0xff] }
  0x97   :  { %802 = vmatpush1.bf16.msra.mxu0 %v2613_v41  ;;  %v1064_v41 = vld [vmem:[%s3607_s5 + $0x38] sm:$0xff] }
  0x98   :  { %803 = vmatprep.subr.bf16.mxu0 %v2618_v42  ;;  %v2465_v42 = vpack.c.bf16 %v1064_v41, %v1063_v40  ;;  %v2679_v40 = vld [vmem:[%s3617_s15 + $0x38] ss:$28 sps:$4 sm:$0xff]  }
  0x99   :  { %v2684_v41 = vld [vmem:[%s3617_s15 + $0x74] ss:$28 sps:$4 sm:$0xff]  }
  0x9b   :  { %804 = vmatpush1.bf16.msra.mxu0 %v2616_v43  ;;  %v1065_v43 = vld [vmem:[%s3607_s5 + $0x40] sm:$0xff] }
  0x9c   :  { %805 = vmatprep.subr.bf16.mxu0 %v2621_v44  ;;  %v1066_v44 = vld [vmem:[%s3607_s5 + $0x48] sm:$0xff] }
  0x9f   :  { %806 = vmatpush1.bf16.msra.mxu0 %v2619_v45  ;;  %v2468_v45 = vpack.c.bf16 %v1066_v44, %v1065_v43  ;;  %v2687_v43 = vld [vmem:[%s3617_s15 + $0xac] ss:$28 sps:$4 sm:$0xff]  }
  0xa0   :  { %807 = vmatprep.subr.bf16.mxu0 %v2624_v46  ;;  %v1067_v46 = vld [vmem:[%s3607_s5 + $0x50] sm:$0xff]  ;;  %v2685_v44 = vld [vmem:[%s3617_s15 + $0xa8] ss:$28 sps:$4 sm:$0xff]  }
  0xa3   :  { %808 = vmatpush1.bf16.msra.mxu0 %v2622_v47  ;;  %v1068_v47 = vld [vmem:[%s3607_s5 + $0x58] sm:$0xff] }
  0xa4   :  { %809 = vmatprep.subr.bf16.mxu0 %v2627_v48  ;;  %v2471_v48 = vpack.c.bf16 %v1068_v47, %v1067_v46  ;;  %v2688_v46 = vld [vmem:[%s3617_s15 + $0xe0] ss:$28 sps:$4 sm:$0xff]  }
  0xa5   :  { %v2693_v47 = vld [vmem:[%s3617_s15 + $0x11c] ss:$28 sps:$4 sm:$0xff]  }
  0xa7   :  { %810 = vmatpush1.bf16.msra.mxu0 %v2625_v49  ;;  %v1069_v49 = vld [vmem:[%s3607_s5 + $0x60] sm:$0xff] }
  0xa8   :  { %811 = vmatprep.subr.bf16.mxu0 %v2630_v50  ;;  %v1070_v50 = vld [vmem:[%s3607_s5 + $0x68] sm:$0xff] }
  0xab   :  { %812 = vmatpush1.bf16.msra.mxu0 %v2628_v51  ;;  %v2474_v51 = vpack.c.bf16 %v1070_v50, %v1069_v49  ;;  %v2696_v49 = vld [vmem:[%s3617_s15 + $0x154] ss:$28 sps:$4 sm:$0xff]  }
  0xac   :  { %813 = vmatprep.subr.bf16.mxu0 %v2633_v52  ;;  %v1071_v52 = vld [vmem:[%s3607_s5 + $0x70] sm:$0xff] }
  0xad   :  { %v2694_v50 = vld [vmem:[%s3617_s15 + $0x150] ss:$28 sps:$4 sm:$0xff]  }
  0xaf   :  { %814 = vmatpush1.bf16.msra.mxu0 %v2631_v53  ;;  %v1072_v53 = vld [vmem:[%s3607_s5 + $0x78] sm:$0xff] }
  0xb0   :  { %815 = vmatprep.subr.bf16.mxu0 %v2636_v54  ;;  %v2477_v54 = vpack.c.bf16 %v1072_v53, %v1071_v52  ;;  %v2697_v52 = vld [vmem:[%s3617_s15 + $0x188] ss:$28 sps:$4 sm:$0xff]  }
  0xb1   :  { %v2702_v53 = vld [vmem:[%s3617_s15 + $0xc] ss:$28 sps:$4 sm:$0xff]  }
  0xb3   :  { %816 = vmatpush1.bf16.msra.mxu0 %v2634_v55  ;;  %v2798_v55 = vmov 0.0  }
  0xb4   :  { %817 = vmatprep.subr.bf16.mxu0 %v2639_v56  ;;  %v1151_v56 = vld [vmem:[%s3609_s7] sm:$0xff] }
  0xb7   :  { %818 = vmatpush1.bf16.msra.mxu0 %v2637_v57  ;;  %v1152_v57 = vld [vmem:[%s3609_s7 + $0x8] sm:$0xff] }
  0xb8   :  { %819 = vmatprep.subr.bf16.mxu0 %v2642_v58  ;;  %v2480_v58 = vpack.c.bf16 %v1152_v57, %v1151_v56 }
  0xbb   :  { %820 = vmatpush1.bf16.msra.mxu0 %v2640_v59 }
  0xbc   :  { %821 = vmatprep.subr.bf16.mxu0 %v2645_v60  ;;  %v2217_v60 = vld [vmem:[%s3606_s4] ss:$0 sm:$0xff] }
  0xbf   :  { %822 = vmatpush1.bf16.msra.mxu0 %v2643_v61 }
  0xc0   :  { %823 = vmatprep.subr.bf16.mxu0 %v2648_v62 }
  0xc3   :  { %824 = vmatpush1.bf16.msra.mxu0 %v2646_v63 }
  0xc4   :  { %825 = vmatprep.subr.bf16.mxu0 %v2651_v0 }
  0xc7   :  { %826 = vmatpush1.bf16.msra.mxu0 %v2649_v1 }
  0xc8   :  { %836 = vmatprep.subr.bf16.mxu0 %v2655_v2 }
  0xca   :  { %828 = vmatmul.mubr.bf16.vlgmr.msra.gmra.mrb[0].mxu0 %v106_v3  ;;  %v1153_v3 = vld [vmem:[%s3609_s7 + $0x10] sm:$0xff] }
  0xcb   :  { %837 = vmatpush1.bf16.msra.mxu0 %v2653_v4  ;;  %868 = vmatprep.mubr.bf16.mxu0 %v2795_v6  ;;  %v2234_v4 = vld [vmem:[%s3608_s6] ss:$0 sm:$0xff] }
  0xcc   :  { %2479 = vmatprep.subr.bf16.mxu0 %v2796_v14 }
  0xd6   :  { %2216 = vmatmul.mubr.msk.bf16.vlgmr.msra.gmra.mrb[0].mxu0 %vm709_vm0, %v108_v8 }
  0xd7   :  { %2408 = vmatprep.mubr.msk.f32.mxu0 %vm2797_vm1, %v2798_v55  ;;  %2481 = vmatpush3.bf16.msra.mxu0 %v2480_v58 }
  0xd8   :  { %2406 = vmatprep.subr.mxu0 %v2798_v55 }
  0xdb   :  { %2407 = vmatpush3.msra.mxu0 %v1153_v3  ;;  %v2706_v3 = vld [vmem:[%s3617_s15 + $0x78] ss:$28 sps:$4 sm:$0xff]  }
  0xdc   :  { %2411 = vmatprep.subr.mxu0 %v2798_v55 }
 0x1a9   :  { %v870_v21 = vpop.f32.mrb[0].mxu0 }
 0x1aa   :  { %v2486_v22 = vadd.f32 %v870_v21, %v212_v19  ;;  %v872_v23 = vpop.f32.mrb[1].mxu0  ;;  %v1322_v19 = vld [vmem:[%s3613_s11] sm:$0xff] }
 0x1ab   :  { %v2487_v24 = vadd.f32 %v872_v23, %v216_v20  ;;  %v874_v25 = vpop.f32.mrb[2].mxu0  ;;  %v1323_v20 = vld [vmem:[%s3613_s11 + $0x8] sm:$0xf] }
 0x1ac   :  { %v877_v26 = vmax.f32 %v2486_v22, 0.0  ;;  %v875_v27 = vpop.f32.mrb[3].mxu0  ;;  %v2483_v21 = vpack.c.bf16 %v1323_v20, %v1322_v19  ;;  %v2237_v22 = vld [vmem:[%s3612_s10] ss:$0 sm:$0xff]  ;;  %v2726_v19 = vld [vmem:[%s3617_s15 + $0x14] ss:$28 sps:$4 sm:$0xff]  }
 0x1ad   :  { %v878_v30 = vmax.f32 %v2487_v24, 0.0  ;;  %v2724_v20 = vld [vmem:[%s3617_s15 + $0x10] ss:$28 sps:$4 sm:$0xff]  }
 0x1ae   :  { %v879_v33 = vpack.c.bf16 %v877_v26, %v877_v26  ;;  %v2672_v26 = vld [vmem:[%s3615_s13] sm:$0xff]  }
 0x1af   :  { %v880_v31 = vpack.c.bf16 %v878_v30, %v878_v30  ;;  %v2675_v30 = vld [vmem:[%s3615_s13 + $0x18] sm:$0xff]  }
 0x1b1   :  { %1048 = vmatprep.mubr.bf16.mxu1 %v880_v31  ;;  %v2678_v31 = vld [vmem:[%s3617_s15 + $0x4] ss:$28 sps:$4 sm:$0xff]  }
 0x1b2   :  { %1049 = vmatmul.mubr.bf16.vlgmr.msra.gmra.mrb[0].mxu1 %v879_v33 }
 0x1b3   :  { %2457 = vmatpush3.bf16.msra.mxu1 %v2456_v32  ;;  %2399 = vmatprep.mubr.msk.f32.mxu1 %vm2797_vm1, %v2798_v55  ;;  %v2240_v32 = vld [vmem:[%s3614_s12] ss:$0 sm:$0xff] }
 0x1b4   :  { %2458 = vmatprep.subr.bf16.mxu1 %v2796_v14 }
 0x1b7   :  { %2460 = vmatpush3.bf16.msra.mxu1 %v2459_v36 }
 0x1b8   :  { %2461 = vmatprep.subr.bf16.mxu1 %v2796_v14 }
 0x1bb   :  { %2463 = vmatpush3.bf16.msra.mxu1 %v2462_v39  ;;  %v2681_v39 = vld [vmem:[%s3617_s15 + $0x3c] ss:$28 sps:$4 sm:$0xff]  }
 0x1bc   :  { %2464 = vmatprep.subr.bf16.mxu1 %v2796_v14 }
 0x1bf   :  { %2466 = vmatpush3.bf16.msra.mxu1 %v2465_v42  ;;  %v2682_v42 = vld [vmem:[%s3617_s15 + $0x70] ss:$28 sps:$4 sm:$0xff]  }
 0x1c0   :  { %2467 = vmatprep.subr.bf16.mxu1 %v2796_v14 }
 0x1c3   :  { %2469 = vmatpush3.bf16.msra.mxu1 %v2468_v45  ;;  %v2690_v45 = vld [vmem:[%s3617_s15 + $0xe4] ss:$28 sps:$4 sm:$0xff]  }
 0x1c4   :  { %2470 = vmatprep.subr.bf16.mxu1 %v2796_v14 }
 0x1c7   :  { %2472 = vmatpush3.bf16.msra.mxu1 %v2471_v48  ;;  %v2691_v48 = vld [vmem:[%s3617_s15 + $0x118] ss:$28 sps:$4 sm:$0xff]  }
 0x1c8   :  { %2473 = vmatprep.subr.bf16.mxu1 %v2796_v14 }
 0x1cb   :  { %2475 = vmatpush3.bf16.msra.mxu1 %v2474_v51  ;;  %v2699_v51 = vld [vmem:[%s3617_s15 + $0x18c] ss:$28 sps:$4 sm:$0xff]  }
 0x1cc   :  { %2476 = vmatprep.subr.bf16.mxu1 %v2796_v14 }
 0x1cf   :  { %2478 = vmatpush3.bf16.msra.mxu1 %v2477_v54  ;;  %v2243_v54 = vld [vmem:[%s3616_s14] ss:$0 sm:$0xff] }
 0x1d0   :  { %2482 = vmatprep.subr.bf16.mxu1 %v2796_v14 }
 0x285   :  { %v2321_v59 = vpop.f32.mrb[0].mxu1 }
 0x286   :  { %v2322_v61 = vpop.f32.mrb[1].mxu1 }
 0x287   :  { %v2323_v62 = vadd.f32 %v2322_v61, %v2321_v59  ;;  %v2324_v63 = vpop.f32.mrb[2].mxu1 }
 0x288   :  { %v2325_v0 = vpop.f32.mrb[3].mxu1 }
 0x289   :  { %v1051_v1 = vadd.f32 %v2323_v62, %v2217_v60  ;;  %v2700_v62 = vld [vmem:[%s3617_s15 + $0x8] ss:$28 sps:$4 sm:$0xff]  }
 0x28a   :  { %v2705_v0 = vld [vmem:[%s3617_s15 + $0x44] ss:$28 sps:$4 sm:$0xff]  }
 0x28b   :  { %v1056_v2 = vmax.f32 %v1051_v1, 0.0  ;;  %v2703_v1 = vld [vmem:[%s3617_s15 + $0x40] ss:$28 sps:$4 sm:$0xff]  }
 0x28d   :  { %2400 = vmatmul.mubr.f32.vlgmr.msra.gmra.mrb[4].mxu1 %v1056_v2  ;;  %v2708_v2 = vld [vmem:[%s3617_s15 + $0x7c] ss:$28 sps:$4 sm:$0xff]  }
 0x28e   :  { %2420 = vmatprep.mubr.msk.f32.mxu1 %vm2797_vm1, %v2798_v55  ;;  %2485 = vmatpush3.bf16.msk.msra.mxu1 %vm2484_vm7, %v2483_v21  ;;  %v2729_v21 = vld [vmem:[%s3617_s15 + $0x4c] ss:$28 sps:$4 sm:$0xff]  }
 0x28f   :  { %2423 = vmatprep.subr.bf16.mxu1 %v2798_v55 }
 0x360   :  { %v1146_v5 = vpop.f32.mrb[4].mxu1 }
 0x361   :  { %v1147_v7 = vadd.f32 %v2234_v4, %v1146_v5  ;;  %v2401_v8 = vpop.f32.mrb[5].mxu1  ;;  %v2711_v4 = vld [vmem:[%s3617_s15 + $0xb4] ss:$28 sps:$4 sm:$0xff]  }
 0x362   :  { %v2709_v5 = vld [vmem:[%s3617_s15 + $0xb0] ss:$28 sps:$4 sm:$0xff]   ;;  %v2712_v8 = vld [vmem:[%s3617_s15 + $0xe8] ss:$28 sps:$4 sm:$0xff]  }
 0x363   :  { %v1150_v9 = vmax.f32 %v1147_v7, 0.0  ;;  %v2714_v7 = vld [vmem:[%s3617_s15 + $0xec] ss:$28 sps:$4 sm:$0xff]  }
 0x365   :  { %2409 = vmatmul.mubr.msk.f32.vlgmr.msra.gmra.mrb[4].mxu0 %vm1161_vm2, %v1150_v9  ;;  %v2717_v9 = vld [vmem:[%s3617_s15 + $0x124] ss:$28 sps:$4 sm:$0xff]  }
 0x366   :  { %2413 = vmatprep.mubr.msk.f32.mxu0 %vm2797_vm1, %v2798_v55  ;;  %2412 = vmatpush3.msk.msra.mxu0 %vm1247_vm3, %v1235_v10  ;;  %v2715_v10 = vld [vmem:[%s3617_s15 + $0x120] ss:$28 sps:$4 sm:$0xff]  }
 0x438   :  { %v1231_v12 = vpop.f32.mrb[4].mxu0 }
 0x439   :  { %v1232_v14 = vadd.f32 %v2235_v11, %v1231_v12  ;;  %v2410_v17 = vpop.f32.mrb[5].mxu0  ;;  %v2720_v11 = vld [vmem:[%s3617_s15 + $0x15c] ss:$28 sps:$4 sm:$0xff]  }
 0x43a   :  { %v2718_v12 = vld [vmem:[%s3617_s15 + $0x158] ss:$28 sps:$4 sm:$0xff]   ;;  %v2721_v17 = vld [vmem:[%s3617_s15 + $0x190] ss:$28 sps:$4 sm:$0xff]  }
 0x43b   :  { %2414 = vmatmul.mubr.msk.f32.vlgmr.msra.gmra.mrb[6].mxu0 %vm1243_vm4, %v1232_v14  ;;  %v2723_v14 = vld [vmem:[%s3617_s15 + $0x194] ss:$28 sps:$4 sm:$0xff]  }
 0x50e   :  { %v1317_v23 = vpop.f32.mrb[6].mxu0 }
 0x50f   :  { %v1318_v24 = vadd.f32 %v2237_v22, %v1317_v23  ;;  %v2415_v25 = vpop.f32.mrb[7].mxu0  ;;  %v2727_v22 = vld [vmem:[%s3617_s15 + $0x48] ss:$28 sps:$4 sm:$0xff]  }
 0x510   :  { %v2732_v23 = vld [vmem:[%s3617_s15 + $0x84] ss:$28 sps:$4 sm:$0xff]   ;;  %v2735_v25 = vld [vmem:[%s3617_s15 + $0xbc] ss:$28 sps:$4 sm:$0xff]  }
 0x511   :  { %v1321_v27 = vmax.f32 %v1318_v24, 0.0  ;;  %v2730_v24 = vld [vmem:[%s3617_s15 + $0x80] ss:$28 sps:$4 sm:$0xff]  }
 0x513   :  { %2421 = vmatmul.mubr.msk.f32.vlgmr.msra.gmra.mrb[6].mxu1 %vm1331_vm8, %v1321_v27  ;;  %v2736_v27 = vld [vmem:[%s3617_s15 + $0xf0] ss:$28 sps:$4 sm:$0xff]  }
 0x514   :  { %2424 = vmatpush3.bf16.msra.mxu1 %v2672_v26  ;;  %2431 = vmatprep.mubr.msk.bf16.mxu1 %vm2797_vm1, %v2798_v55  ;;  %v2738_v26 = vld [vmem:[%s3617_s15 + $0xf4] ss:$28 sps:$4 sm:$0xff]  }
 0x515   :  { %2425 = vmatprep.subr.bf16.mxu1 %v2798_v55 }
 0x518   :  { %2426 = vmatpush3.bf16.msra.mxu1 %v2673_v28  ;;  %v2741_v28 = vld [vmem:[%s3617_s15 + $0x12c] ss:$28 sps:$4 sm:$0xff]  }
 0x519   :  { %2427 = vmatprep.subr.bf16.mxu1 %v2798_v55 }
 0x51c   :  { %2428 = vmatpush3.bf16.msra.mxu1 %v2674_v29  ;;  %v2739_v29 = vld [vmem:[%s3617_s15 + $0x128] ss:$28 sps:$4 sm:$0xff]  }
 0x51d   :  { %2429 = vmatprep.subr.bf16.mxu1 %v2798_v55 }
 0x520   :  { %2430 = vmatpush3.bf16.msra.mxu1 %v2675_v30  ;;  %v2744_v30 = vld [vmem:[%s3617_s15 + $0x164] ss:$28 sps:$4 sm:$0xff]  }
 0x521   :  { %1885 = vmatprep.subr.bf16.mxu1 %v2678_v31  ;;  %v2742_v31 = vld [vmem:[%s3617_s15 + $0x160] ss:$28 sps:$4 sm:$0xff]  }
 0x5e6   :  { %v1405_v33 = vpop.f32.mrb[6].mxu1 }
 0x5e7   :  { %v1406_v34 = vadd.f32 %v2240_v32, %v1405_v33  ;;  %v2422_v35 = vpop.f32.mrb[7].mxu1  ;;  %v2747_v32 = vld [vmem:[%s3617_s15 + $0x19c] ss:$28 sps:$4 sm:$0xff]  }
 0x5e8   :  { %v2745_v33 = vld [vmem:[%s3617_s15 + $0x198] ss:$28 sps:$4 sm:$0xff]   ;;  %v2749_v35 = vld [vmem:[%s3617_s15 + $0x50] ss:$28 sps:$4 sm:$0xff]  }
 0x5e9   :  { %v1409_v36 = vmax.f32 %v1406_v34, 0.0  ;;  %v2748_v34 = vld [vmem:[%s3617_s15 + $0x18] ss:$28 sps:$4 sm:$0xff]  }
 0x5eb   :  { %v1410_v38 = vpack.c.bf16 %v1409_v36, %v1409_v36  ;;  %v2750_v36 = vld [vmem:[%s3617_s15 + $0x88] ss:$28 sps:$4 sm:$0xff]  }
 0x5ed   :  { %2432 = vmatmul.mubr.msk.bf16.vlgmr.msra.gmra.mrb[8].mxu1 %vm1450_vm9, %v1410_v38  ;;  %v2752_v38 = vld [vmem:[%s3617_s15 + $0xf8] ss:$28 sps:$4 sm:$0xff]  }
 0x5ee   :  { %1886 = vmatpush1.bf16.msra.mxu1 %v2676_v37  ;;  %1917 = vmatprep.mubr.bf16.mxu1 %v2795_v6  ;;  %v2751_v37 = vld [vmem:[%s3617_s15 + $0xc0] ss:$28 sps:$4 sm:$0xff]  }
 0x5ef   :  { %1887 = vmatprep.subr.bf16.mxu1 %v2681_v39  ;;  %v2753_v39 = vld [vmem:[%s3617_s15 + $0x130] ss:$28 sps:$4 sm:$0xff]  }
 0x5f2   :  { %1888 = vmatpush1.bf16.msra.mxu1 %v2679_v40  ;;  %v2754_v40 = vld [vmem:[%s3617_s15 + $0x168] ss:$28 sps:$4 sm:$0xff]  }
 0x5f3   :  { %1889 = vmatprep.subr.bf16.mxu1 %v2684_v41  ;;  %v2755_v41 = vld [vmem:[%s3617_s15 + $0x1a0] ss:$28 sps:$4 sm:$0xff]  }
 0x5f6   :  { %1890 = vmatpush1.bf16.msra.mxu1 %v2682_v42  ;;  %v1560_v42 = vld [vmem:[%s3618_s16] sm:$0x7f] }
 0x5f7   :  { %1891 = vmatprep.subr.bf16.mxu1 %v2687_v43  ;;  %v1565_v43 = vrot.slane %v1560_v42, %v211_v15 }
 0x5fa   :  { %1892 = vmatpush1.bf16.msra.mxu1 %v2685_v44  ;;  %v1569_v44 = vrot.slane %v1560_v42, %v215_v18 }
 0x5fb   :  { %1893 = vmatprep.subr.bf16.mxu1 %v2690_v45 }
 0x5fe   :  { %1894 = vmatpush1.bf16.msra.mxu1 %v2688_v46 }
 0x5ff   :  { %1895 = vmatprep.subr.bf16.mxu1 %v2693_v47 }
 0x602   :  { %1896 = vmatpush1.bf16.msra.mxu1 %v2691_v48 }
 0x603   :  { %1897 = vmatprep.subr.bf16.mxu1 %v2696_v49 }
 0x606   :  { %1898 = vmatpush1.bf16.msra.mxu1 %v2694_v50 }
 0x607   :  { %1899 = vmatprep.subr.bf16.mxu1 %v2699_v51 }
 0x60a   :  { %1900 = vmatpush1.bf16.msra.mxu1 %v2697_v52 }
 0x60b   :  { %1926 = vmatprep.subr.bf16.mxu1 %v2702_v53  ;;  %v1572_v53 = vsub.s32 2, %v2918_v13 }
 0x6c0   :  { %v1488_v56 = vpop.f32.mrb[8].mxu1 }
 0x6c1   :  { %v1489_v57 = vadd.f32 %v2243_v54, %v1488_v56  ;;  %v2433_v58 = vpop.f32.mrb[9].mxu1  ;;  %v1576_v54 = vsub.s32 3, %v2918_v13  ;;  %v1573_v56 = vrot.slane %v1560_v42, %v1572_v53 }
 0x6c2   :  { %v1491_v59 = vpop.f32.mrb[10].mxu1 }
 0x6c3   :  { %v1494_v60 = vmax.f32 %v1489_v57, 0.0  ;;  %v2434_v61 = vpop.f32.mrb[11].mxu1  ;;  %v1577_v15 = vrot.slane %v1560_v42, %v1576_v54 }
 0x6c5   :  { %v3442_v63 = vpack.c.bf16 %v1494_v60, %v1494_v60 }
 0x6c7   :  { %1918 = vmatmul.mubr.bf16.vlgmr.msra.gmra.mrb[12].mxu1 %v3442_v63 }
 0x6c8   :  { %1927 = vmatpush1.bf16.msra.mxu1 %v2700_v62  ;;  %1958 = vmatprep.mubr.bf16.mxu1 %v2795_v6 }
 0x6c9   :  { %1928 = vmatprep.subr.bf16.mxu1 %v2705_v0 }
 0x6cc   :  { %1929 = vmatpush1.bf16.msra.mxu1 %v2703_v1 }
 0x6cd   :  { %1930 = vmatprep.subr.bf16.mxu1 %v2708_v2 }
 0x6d0   :  { %1931 = vmatpush1.bf16.msra.mxu1 %v2706_v3 }
 0x6d1   :  { %1932 = vmatprep.subr.bf16.mxu1 %v2711_v4  ;;  %v1580_v4 = vsub.s32 4, %v2918_v13 }
 0x6d4   :  { %1933 = vmatpush1.bf16.msra.mxu1 %v2709_v5  ;;  %v1584_v5 = vsub.s32 5, %v2918_v13 }
 0x6d5   :  { %1934 = vmatprep.subr.bf16.mxu1 %v2714_v7  ;;  %v1581_v7 = vrot.slane %v1560_v42, %v1580_v4 }
 0x6d8   :  { %1935 = vmatpush1.bf16.msra.mxu1 %v2712_v8  ;;  %v1585_v8 = vrot.slane %v1560_v42, %v1584_v5 }
 0x6d9   :  { %1936 = vmatprep.subr.bf16.mxu1 %v2717_v9 }
 0x6dc   :  { %1937 = vmatpush1.bf16.msra.mxu1 %v2715_v10 }
 0x6dd   :  { %1938 = vmatprep.subr.bf16.mxu1 %v2720_v11 }
 0x6e0   :  { %1939 = vmatpush1.bf16.msra.mxu1 %v2718_v12 }
 0x6e1   :  { %1940 = vmatprep.subr.bf16.mxu1 %v2723_v14 }
 0x6e4   :  { %1941 = vmatpush1.bf16.msra.mxu1 %v2721_v17 }
 0x6e5   :  { %1967 = vmatprep.subr.bf16.mxu1 %v2726_v19 }
 0x6e7   :  { %1959 = vmatmul.mubr.bf16.vlgmr.msra.gmra.mrb[16].mxu1 %v3442_v63 }
 0x6e8   :  { %1968 = vmatpush1.bf16.msra.mxu1 %v2724_v20  ;;  %1999 = vmatprep.mubr.bf16.mxu1 %v2795_v6  ;;  %v2733_v6 = vld [vmem:[%s3617_s15 + $0xb8] ss:$28 sps:$4 sm:$0xff]   ;;  %s2800_s15 = smov [#allocation2]  }
 0x6e9   :  { %1969 = vmatprep.subr.bf16.mxu1 %v2729_v21  ;;  %s2110_s16 = sshll.u32 %s2800_s15, 4  ;;  %s2111_s16 = int_to_ptr.vmem [resolvable:$true] %s2110_s16 }
 0x6ea   :  { %s2770_s1 = scalar_lea.vmem %s2111_s16, 224  ;;  %p2775_p1 = scmp.lt.s32.totalorder %s2111_s16, %s2111_s16 }
 0x6eb   :  { %p2771_p0 = scmp.ne.s32.totalorder %s2111_s16, %s2770_s1  ;;  %p2776_p2 = scmp.lt.s32.totalorder %s2770_s1, %s2770_s1 }
 0x6ec   :  { %1970 = vmatpush1.bf16.msra.mxu1 %v2727_v22  ;;  %v1588_v22 = vsub.s32 6, %v2918_v13 }
 0x6ed   :  { %1971 = vmatprep.subr.bf16.mxu1 %v2732_v23  ;;  %p2777_p3 = por %p2776_p2, %p2775_p1 }
 0x6ee   :  { %v1589_v23 = vrot.slane %v1560_v42, %v1588_v22 }
 0x6ef   :  { %p2778_p4 = pnand %p2777_p3, %p2771_p0 }
 0x6f0   :  { %1972 = vmatpush1.bf16.msra.mxu1 %v2730_v24 }
 0x6f1   :  { %1973 = vmatprep.subr.bf16.mxu1 %v2735_v25 }
 0x6f4   :  { %1974 = vmatpush1.bf16.msra.mxu1 %v2733_v6 }
 0x6f5   :  { %1975 = vmatprep.subr.bf16.mxu1 %v2738_v26 }
 0x6f8   :  { %1976 = vmatpush1.bf16.msra.mxu1 %v2736_v27 }
 0x6f9   :  { %1977 = vmatprep.subr.bf16.mxu1 %v2741_v28 }
 0x6fc   :  { %1978 = vmatpush1.bf16.msra.mxu1 %v2739_v29 }
 0x6fd   :  { %1979 = vmatprep.subr.bf16.mxu1 %v2744_v30 }
 0x700   :  { %1980 = vmatpush1.bf16.msra.mxu1 %v2742_v31 }
 0x701   :  { %1981 = vmatprep.subr.bf16.mxu1 %v2747_v32 }
 0x704   :  { %1982 = vmatpush1.bf16.msra.mxu1 %v2745_v33 }
 0x705   :  { %2435 = vmatprep.subr.bf16.mxu1 %v2798_v55 }
 0x707   :  { %2000 = vmatmul.mubr.bf16.vlgmr.msra.gmra.mrb[20].mxu1 %v3442_v63 }
 0x708   :  { %2436 = vmatpush3.bf16.msra.mxu1 %v2748_v34  ;;  %2451 = vmatprep.mubr.msk.bf16.mxu1 %vm2797_vm1, %v2798_v55 }
 0x709   :  { %2437 = vmatprep.subr.bf16.mxu1 %v2798_v55 }
 0x70c   :  { %2438 = vmatpush3.bf16.msra.mxu1 %v2749_v35 }
 0x70d   :  { %2439 = vmatprep.subr.bf16.mxu1 %v2798_v55 }
 0x710   :  { %2440 = vmatpush3.bf16.msra.mxu1 %v2750_v36 }
 0x711   :  { %2441 = vmatprep.subr.bf16.mxu1 %v2798_v55 }
 0x714   :  { %2442 = vmatpush3.bf16.msra.mxu1 %v2751_v37 }
 0x715   :  { %2443 = vmatprep.subr.bf16.mxu1 %v2798_v55 }
 0x718   :  { %2444 = vmatpush3.bf16.msra.mxu1 %v2752_v38 }
 0x719   :  { %2445 = vmatprep.subr.bf16.mxu1 %v2798_v55 }
 0x71c   :  { %2446 = vmatpush3.bf16.msra.mxu1 %v2753_v39 }
 0x71d   :  { %2447 = vmatprep.subr.bf16.mxu1 %v2798_v55 }
 0x720   :  { %2448 = vmatpush3.bf16.msra.mxu1 %v2754_v40 }
 0x721   :  { %2449 = vmatprep.subr.bf16.mxu1 %v2798_v55 }
 0x724   :  { %2450 = vmatpush3.bf16.msra.mxu1 %v2755_v41 }
 0x727   :  { %2452 = vmatmul.mubr.bf16.vlgmr.msra.gmra.mrb[24].mxu1 %v3442_v63 }
 0x79a   :  { %v1919_v45 = vpop.f32.mrb[12].mxu1 }
 0x79b   :  { %v1920_v46 = vadd.f32 %v1919_v45, %v1565_v43  ;;  %v1921_v47 = vpop.f32.mrb[13].mxu1 }
 0x79c   :  { %v1922_v48 = vadd.f32 %v1921_v47, %v1569_v44  ;;  %v1923_v49 = vpop.f32.mrb[14].mxu1 }
 0x79d   :  { %2756 = vtanh.f32 %v1920_v46  ;;  %v1924_v55 = vpop.f32.mrb[15].mxu1 }
 0x79e   :  { %2758 = vtanh.f32 %v1922_v48 }
 0x7a7   :  { %v2757_v50 = vpop.eup %2756 }
 0x7a8   :  { %v2759_v51 = vpop.eup %2758 }
 0x7a9   :  { %v2062_v52 = vcombine.low %v2757_v50, %v2759_v51 }
 0x7ab   :  { %v2070_v1 = vrot.slane %v2062_v52, %v2927_v16 }
 0x7ba   :  { %v1960_v57 = vpop.f32.mrb[16].mxu1 }
 0x7bb   :  { %v1961_v58 = vadd.f32 %v1960_v57, %v1573_v56  ;;  %v1962_v18 = vpop.f32.mrb[17].mxu1 }
 0x7bc   :  { %v1963_v59 = vadd.f32 %v1962_v18, %v1577_v15  ;;  %v1964_v60 = vpop.f32.mrb[18].mxu1 }
 0x7bd   :  { %2760 = vtanh.f32 %v1961_v58  ;;  %v1965_v61 = vpop.f32.mrb[19].mxu1 }
 0x7be   :  { %2762 = vtanh.f32 %v1963_v59 }
 0x7c7   :  { %v2761_v62 = vpop.eup %2760 }
 0x7c8   :  { %v2763_v63 = vpop.eup %2762 }
 0x7c9   :  { %v2063_v0 = vcombine.low %v2761_v62, %v2763_v63 }
 0x7cb   :  { %v2077_v2 = vrot.slane %v2063_v0, %v2927_v16 }
 0x7cd   :  { %v2078_v3 = vcombine.low %v2070_v1, %v2077_v2 }
 0x7cf   :  { %2097 = vst [vmem:[#allocation2] sm:$0xff] %v2078_v3 }
 0x7da   :  { %v2001_v9 = vpop.f32.mrb[20].mxu1 }
 0x7db   :  { %v2002_v10 = vadd.f32 %v2001_v9, %v1581_v7  ;;  %v2003_v11 = vpop.f32.mrb[21].mxu1 }
 0x7dc   :  { %v2004_v12 = vadd.f32 %v2003_v11, %v1585_v8  ;;  %v2005_v14 = vpop.f32.mrb[22].mxu1 }
 0x7dd   :  { %2764 = vtanh.f32 %v2002_v10  ;;  %v2006_v17 = vpop.f32.mrb[23].mxu1 }
 0x7de   :  { %2766 = vtanh.f32 %v2004_v12 }
 0x7e7   :  { %v2765_v19 = vpop.eup %2764 }
 0x7e8   :  { %v2767_v20 = vpop.eup %2766 }
 0x7e9   :  { %v2079_v21 = vcombine.low %v2765_v19, %v2767_v20 }
 0x7eb   :  { %v2086_v29 = vrot.slane %v2079_v21, %v2927_v16 }
 0x7fa   :  { %v2042_v24 = vpop.f32.mrb[24].mxu1 }
 0x7fb   :  { %v2043_v25 = vadd.f32 %v2042_v24, %v1589_v23  ;;  %v2453_v6 = vpop.f32.mrb[25].mxu1 }
 0x7fc   :  { %v2045_v26 = vpop.f32.mrb[26].mxu1 }
 0x7fd   :  { %2768 = vtanh.f32 %v2043_v25  ;;  %v2454_v27 = vpop.f32.mrb[27].mxu1 }
 0x807   :  { %v2769_v28 = vpop.eup %2768 }
 0x808   :  { %v2093_v30 = vrot.slane %v2769_v28, %v2927_v16 }
 0x80a   :  { %v2094_v13 = vcombine.low %v2086_v29, %v2093_v30 }
 0x80c   :  { %2103 = vst.msk [vmem:[#allocation2 + $0x8] sm:$0x3f] %vm2102_vm14, %v2094_v13 }
 0x80d   :  { %2781 = shalt.err (!%p2778_p4)
}
 0x80e   :  { %s2782_s12 = scalar_lea.hbm %s3619_s17, 224 }
 0x80f   :  { %p2783_p5 = scmp.ne.s32.totalorder %s3619_s17, %s2782_s12  ;;  %p2786_p6 = scmp.lt.u32.totalorder %s2782_s12, %s3619_s17 }
 0x811   :  { %p2788_p7 = pnand %p2786_p6, %p2783_p5 }
 0x813   :  { %2791 = shalt.err (!%p2788_p7)
}
 0x814   :  { %2113 = dma.vmem_to_hbm [thread:$0]  %s2111_s16, 224, %s3619_s17, [#allocation3]  }
 0x815   :  { %2792 = dma.done.wait [#allocation3], 224  }
 0x816   :  { %2793 = vsyncadd [#allocation3], 4294967072 }
 0x817   :  { %2117 = vsyncpa [#allocation3], 1 }

</bundles_post_ra>
